<compile_context>
chip_gen: v7x
topology: tpu7x:2x2x1
jax: 0.10.0
libtpu: 0.0.40
codegen_flags: <defaults>
</compile_context>

<pallas_src>
import functools

import jax
import jax.numpy as jnp
from jax.experimental import pallas as pl
from jax.experimental.pallas import tpu as pltpu


def diagonal_net_kernel(x_ref, u_ref, v_ref, o_ref, *, L):
    # u, v are tiny (1, D) row vectors that stay resident in VMEM (same block
    # every grid step); recomputing w per tile is negligible VPU work in this
    # HBM-bound kernel and keeps the full forward inside the kernel.
    u = u_ref[...]                      # (1, D)
    v = v_ref[...]                      # (1, D)
    w = u ** L - v ** L                 # (1, D)
    x = x_ref[...]                      # (TILE_B, D)
    # Contract the feature dim of both operands (trans_b matvec on the MXU):
    #   (1, D) . (TILE_B, D)^T -> (1, TILE_B)
    # The output is lane-dense: one wide vector store per 128 results, instead
    # of a masked single-lane store per 8 rows with a (TILE_B, 1) layout.
    o_ref[...] = jax.lax.dot_general(
        w, x,
        dimension_numbers=(((1,), (1,)), ((), ())),
        preferred_element_type=jnp.float32,
        precision=jax.lax.Precision.HIGHEST,
    )


def diagonal_net_forward(x, u, v, L, *, max_tile_b=4096):
    """Pallas forward for DiagonalNet: (x @ (u**L - v**L))[..., None]."""
    # NOTE: for tiny batches (like the demo below) a plain fused jnp expression
    # would beat any pallas_call; the kernel targets large B.
    orig_dtype = x.dtype
    lead = x.shape[:-1]
    D = x.shape[-1]
    xf = x.reshape(-1, D).astype(jnp.float32)
    B = xf.shape[0]
    u2 = u.reshape(1, D).astype(jnp.float32)
    v2 = v.reshape(1, D).astype(jnp.float32)

    if B <= max_tile_b:
        # Single block equal to the full array: always a legal block shape.
        tile_b = B
    else:
        # Cap the x tile at ~4 MiB so 2 double-buffered input tiles (+ output)
        # stay far below even v7x's 32 MiB scoped VMEM default. tile_b must be
        # a multiple of 128 (lane dim of the (1, tile_b) output block).
        budget_bytes = 4 * 1024 * 1024
        tile_b = min(max_tile_b, max(128, (budget_bytes // (D * 4)) // 128 * 128))
    grid = (pl.cdiv(B, tile_b),)

    out_row = pl.pallas_call(
        functools.partial(diagonal_net_kernel, L=L),
        out_shape=jax.ShapeDtypeStruct((1, B), jnp.float32),
        grid=grid,
        in_specs=[
            # Batch-tiled x: auto double-buffered HBM->VMEM pipeline.
            pl.BlockSpec((tile_b, D), lambda i: (i, 0)),
            # u, v: same (1, D) block every step -> fetched once, stays in VMEM.
            pl.BlockSpec((1, D), lambda i: (0, 0)),
            pl.BlockSpec((1, D), lambda i: (0, 0)),
        ],
        # Lane-dense output row: column block i of the (1, B) result.
        # Tail tiles (B % tile_b != 0) are masked on writeback by Pallas.
        out_specs=pl.BlockSpec((1, tile_b), lambda i: (0, i)),
        compiler_params=pltpu.CompilerParams(
            # Batch tiles are independent -> shard across both TCs on v7x.
            dimension_semantics=("parallel",),
        ),
    )(xf, u2, v2)

    return out_row.reshape(*lead, 1).astype(orig_dtype)


def _reference(x, u, v, L):
    w = u ** L - v ** L
    return (x @ w)[..., None]


if __name__ == "__main__":
    # Module hyperparameters (deterministic init, as in DiagonalNet.__init__).
    in_dim = 32
    init_scale = 1.0
    L = 3
    batch = 8

    scale = init_scale / (in_dim * 2) ** 0.5
    key = jax.random.PRNGKey(0)
    k_x, k_u, k_v, k_x2 = jax.random.split(key, 4)

    # --- Check 1: module init (u == v), small batch, single-tile path. ------
    u = scale * jnp.ones((in_dim,), dtype=jnp.float32)
    v = scale * jnp.ones((in_dim,), dtype=jnp.float32)
    x = jax.random.normal(k_x, (batch, in_dim), dtype=jnp.float32)

    out = jax.block_until_ready(diagonal_net_forward(x, u, v, L))
    ref = _reference(x, u, v, L)
    assert out.shape == (batch, 1), out.shape
    assert jnp.allclose(out, ref, atol=1e-4, rtol=5e-3), (out, ref)

    # --- Check 2: perturbed params, multi-tile grid + masked tail tile. -----
    u2 = u + 0.01 * jax.random.normal(k_u, (in_dim,), dtype=jnp.float32)
    v2 = v + 0.01 * jax.random.normal(k_v, (in_dim,), dtype=jnp.float32)
    B2 = 1000  # not a multiple of the tile -> exercises the padded tail block
    x2 = jax.random.normal(k_x2, (B2, in_dim), dtype=jnp.float32)

    out2 = jax.block_until_ready(
        diagonal_net_forward(x2, u2, v2, L, max_tile_b=256))
    ref2 = _reference(x2, u2, v2, L)
    assert out2.shape == (B2, 1), out2.shape
    assert jnp.allclose(out2, ref2, atol=1e-4, rtol=5e-3), (
        jnp.max(jnp.abs(out2 - ref2)))

    print("KERNEL_OK")
</pallas_src>

<mosaic_0001>
module attributes {stable_mosaic.version = 11 : i64} {
  func.func @diagonal_net_kernel(%arg0: i32, %arg1: memref<8x32xf32, #tpu.memory_space<vmem>>, %arg2: memref<1x32xf32, #tpu.memory_space<vmem>>, %arg3: memref<1x32xf32, #tpu.memory_space<vmem>>, %arg4: memref<1x8xf32, #tpu.memory_space<vmem>>) attributes {dimension_semantics = [#tpu.dimension_semantics<parallel>], iteration_bounds = array<i64: 1>, scalar_prefetch = 0 : i64, scratch_operands = 0 : i64, tpu.core_type = #tpu.core_type<tc>, window_params = [{transform_indices = @transform_0, window_bounds = array<i64: 8, 32>}, {pipeline_mode = #tpu.pipeline_mode<synchronous>, transform_indices = @transform_1, window_bounds = array<i64: 1, 32>}, {pipeline_mode = #tpu.pipeline_mode<synchronous>, transform_indices = @transform_2, window_bounds = array<i64: 1, 32>}, {transform_indices = @transform_3, window_bounds = array<i64: 1, 8>}]} {
    %c0 = arith.constant 0 : index
    %c0_0 = arith.constant 0 : index
    %0 = vector.load %arg2[%c0, %c0_0] : memref<1x32xf32, #tpu.memory_space<vmem>>, vector<1x32xf32>
    %c0_1 = arith.constant 0 : index
    %c0_2 = arith.constant 0 : index
    %1 = vector.load %arg3[%c0_1, %c0_2] : memref<1x32xf32, #tpu.memory_space<vmem>>, vector<1x32xf32>
    %2 = arith.mulf %0, %0 : vector<1x32xf32>
    %3 = arith.mulf %0, %2 : vector<1x32xf32>
    %4 = arith.mulf %1, %1 : vector<1x32xf32>
    %5 = arith.mulf %1, %4 : vector<1x32xf32>
    %6 = arith.subf %3, %5 : vector<1x32xf32>
    %c0_3 = arith.constant 0 : index
    %c0_4 = arith.constant 0 : index
    %7 = vector.load %arg1[%c0_3, %c0_4] : memref<8x32xf32, #tpu.memory_space<vmem>>, vector<8x32xf32>
    %cst = arith.constant dense<0.000000e+00> : vector<1x8xf32>
    %8 = tpu.matmul %6, %7, %cst {dimension_numbers = #tpu.dot_dimension_numbers<[1], [1], [0], [0], [0, 0, 1, 0], [], []>, precision = #tpu.contract_precision<fp32>} : vector<1x32xf32>, vector<8x32xf32>, vector<1x8xf32> -> vector<1x8xf32>
    %c0_5 = arith.constant 0 : index
    %c0_6 = arith.constant 0 : index
    %9 = vector.load %arg4[%c0_5, %c0_6] : memref<1x8xf32, #tpu.memory_space<vmem>>, vector<1x8xf32>
    tpu.vector_store %arg4[%c0_5, %c0_6], %8 {strides = array<i32>} : memref<1x8xf32, #tpu.memory_space<vmem>>, vector<1x8xf32>,
    return
  }
  func.func @transform_0(%arg0: i32) -> (i32, i32) {
    %c0_i32 = arith.constant 0 : i32
    %c0_i32_0 = arith.constant 0 : i32
    return %arg0, %c0_i32 : i32, i32
  }
  func.func @transform_1(%arg0: i32) -> (i32, i32) {
    %c0_i32 = arith.constant 0 : i32
    %c0_i32_0 = arith.constant 0 : i32
    %c0_i32_1 = arith.constant 0 : i32
    return %c0_i32, %c0_i32_0 : i32, i32
  }
  func.func @transform_2(%arg0: i32) -> (i32, i32) {
    %c0_i32 = arith.constant 0 : i32
    %c0_i32_0 = arith.constant 0 : i32
    %c0_i32_1 = arith.constant 0 : i32
    return %c0_i32, %c0_i32_0 : i32, i32
  }
  func.func @transform_3(%arg0: i32) -> (i32, i32) {
    %c0_i32 = arith.constant 0 : i32
    %c0_i32_0 = arith.constant 0 : i32
    return %c0_i32, %arg0 : i32, i32
  }
}

</mosaic_0001>

<bundles_post_ra>
// kernel: tpu_custom_call.1
= control target key start
LH: loop header
LB: loop body
LE: loop exit
PB: predicated region body
PF: predicated region fallthrough
CT: control target
= control target key end

     0   :  { %8 = vsyncpa [#allocation3], 0  ;;  %s670_s0 = inlined_call_operand.hbm [shape: f32[8,32], index: 0, kind: input, shape index: {}]   ;;  %s671_s1 = inlined_call_operand.vmem [shape: f32[1,32], index: 1, kind: input, shape index: {}]   ;;  %s672_s2 = inlined_call_operand.vmem [shape: f32[1,32], index: 2, kind: input, shape index: {}]   ;;  %s673_s3 = inlined_call_operand.hbm [shape: f32[1,8], index: 3, kind: output, shape index: {}]  }
   0x1   :  { %9 = vsyncpa [#allocation4], 0  ;;  %s608_s12 = smov [#allocation2]   ;;  %s560_s16 = scalar_lea.hbm %s670_s0, 128 }
   0x2   :  { %s16_s13 = sshll.u32 %s608_s12, 4  ;;  %p561_p0 = scmp.ne.s32.totalorder %s670_s0, %s560_s16  ;;  %s17_s13 = int_to_ptr.vmem [resolvable:$true] %s16_s13 }
   0x3   :  { %p564_p1 = scmp.lt.u32.totalorder %s560_s16, %s670_s0 }
   0x5   :  { %p566_p2 = pnand %p564_p1, %p561_p0 }
   0x7   :  { %569 = shalt.err (!%p566_p2)
}
   0x8   :  { %s570_s21 = scalar_lea.vmem %s17_s13, 128  ;;  %p575_p4 = scmp.lt.s32.totalorder %s17_s13, %s17_s13 }
   0x9   :  { %p571_p3 = scmp.ne.s32.totalorder %s17_s13, %s570_s21  ;;  %p576_p5 = scmp.lt.s32.totalorder %s570_s21, %s570_s21 }
   0xb   :  { %p577_p6 = por %p576_p5, %p575_p4 }
   0xd   :  { %p578_p7 = pnand %p577_p6, %p571_p3 }
   0xf   :  { %581 = shalt.err (!%p578_p7)
}
  0x10   :  { %19 = dma.hbm_to_vmem [thread:$0]  %s670_s0, 128, %s17_s13, [#allocation3]  }
  0x11   :  { %604 = dma.done.wait [#allocation3], 128  }
  0x12   :  { %605 = vsyncadd [#allocation3], 4294967168  ;;  %v609_v0 = vmov 0.0   ;;  %vm610_vm0 = vmmov 0   ;;  %vm35_vm1 = vcmask 261120   ;;  %v34_v1 = vld [vmem:[#allocation2] sm:$0xff] }
  0x13   :  { %532 = vmatprep.subr.mxu0 %v609_v0  ;;  %517 = vmatprep.subr.mxu1 %v609_v0  ;;  %v27_v2 = vld [vmem:[%s671_s1] sm:$0x1]  ;;  %v40_v4 = vsel %vm35_vm1, %v34_v1, 0  ;;  %s611_s0 = smov [#allocation5]   ;;  %vm488_vm2 = vcmask 57344  }
  0x14   :  { %534 = vmatprep.mubr.msk.f32.mxu0 %vm610_vm0, %v609_v0  ;;  %519 = vmatprep.mubr.msk.f32.mxu1 %vm610_vm0, %v609_v0  ;;  %v28_v3 = vld [vmem:[%s672_s2] sm:$0x1]  ;;  %v29_v5 = vmul.f32 %v27_v2, %v27_v2  ;;  %v43_v7 = vand.u32 4294901760, %v40_v4  ;;  %s496_s1 = sshll.u32 %s611_s0, 4  ;;  %s497_s1 = int_to_ptr.vmem [resolvable:$true] %s496_s1 }
  0x15   :  { %v31_v6 = vmul.f32 %v28_v3, %v28_v3  ;;  %s582_s2 = scalar_lea.vmem %s497_s1, 16  ;;  %s586_s28 = scalar_lea.vmem %s497_s1, 32 }
  0x16   :  { %v30_v8 = vmul.f32 %v29_v5, %v27_v2  ;;  %v120_v10 = vsub.f32 %v40_v4, %v43_v7  ;;  %533 = vmatpush3.xpose.msra.mxu0 %v43_v7  ;;  %518 = vmatpush3.xpose.msra.mxu1 %v43_v7  ;;  %p583_p8 = scmp.ne.s32.totalorder %s497_s1, %s582_s2  ;;  %p587_p9 = scmp.lt.s32.totalorder %s497_s1, %s497_s1 }
  0x17   :  { %v32_v9 = vmul.f32 %v31_v6, %v28_v3  ;;  %522 = vmatprep.subr.mxu1 %v609_v0  ;;  %537 = vmatprep.subr.mxu0 %v609_v0  ;;  %p588_p10 = scmp.lt.s32.totalorder %s586_s28, %s582_s2 }
  0x18   :  { %v121_v13 = vand.u32 4294901760, %v120_v10 }
  0x19   :  { %v33_v11 = vsub.f32 %v30_v8, %v32_v9  ;;  %p589_p11 = por %p588_p10, %p587_p9 }
  0x1a   :  { %v122_v16 = vsub.f32 %v120_v10, %v121_v13 }
  0x1b   :  { %v37_v12 = vsel %vm35_vm1, %v33_v11, 0  ;;  %p590_p12 = pnand %p589_p11, %p583_p8 }
  0x1c   :  { %v108_v14 = vand.u32 4294901760, %v37_v12  ;;  %v123_v19 = vand.u32 4294901760, %v122_v16 }
  0x1e   :  { %v109_v15 = vsub.f32 %v37_v12, %v108_v14 }
  0x20   :  { %v110_v17 = vand.u32 4294901760, %v109_v15 }
  0x22   :  { %535 = vmatmul.mubr.f32.vlgmr.msra.gmra.mrb[0].mxu0 %v110_v17  ;;  %v111_v18 = vsub.f32 %v109_v15, %v110_v17 }
  0x23   :  { %538 = vmatpush3.xpose.msra.mxu0 %v121_v13  ;;  %539 = vmatprep.mubr.msk.f32.mxu0 %vm610_vm0, %v609_v0 }
  0x24   :  { %v112_v20 = vand.u32 4294901760, %v111_v18  ;;  %542 = vmatprep.subr.mxu0 %v609_v0 }
  0x26   :  { %520 = vmatmul.mubr.f32.vlgmr.msra.gmra.mrb[0].mxu1 %v112_v20 }
  0x27   :  { %523 = vmatpush3.xpose.msra.mxu1 %v123_v19  ;;  %524 = vmatprep.mubr.msk.f32.mxu1 %vm610_vm0, %v609_v0 }
  0x28   :  { %527 = vmatprep.subr.mxu1 %v609_v0 }
  0x2a   :  { %540 = vmatmul.mubr.f32.vlgmr.msra.gmra.mrb[0].mxu0 %v108_v14 }
  0x2b   :  { %543 = vmatpush3.xpose.msra.mxu0 %v43_v7  ;;  %544 = vmatprep.mubr.msk.f32.mxu0 %vm610_vm0, %v609_v0 }
  0x2e   :  { %525 = vmatmul.mubr.f32.vlgmr.msra.gmra.mrb[0].mxu1 %v108_v14 }
  0x2f   :  { %528 = vmatpush3.xpose.msra.mxu1 %v120_v10  ;;  %529 = vmatprep.mubr.msk.f32.mxu1 %vm610_vm0, %v609_v0 }
  0x32   :  { %545 = vmatmul.mubr.f32.vlgmr.msra.gmra.mrb[0].mxu0 %v108_v14 }
  0x36   :  { %530 = vmatmul.mubr.f32.vlgmr.msra.gmra.mrb[0].mxu1 %v109_v15 }
 0x105   :  { %v484_v21 = vpop.f32.mrb[0].mxu0 }
 0x106   :  { %v546_v22 = vpop.f32.mrb[1].mxu0 }
 0x109   :  { %v264_v23 = vpop.f32.mrb[0].mxu1 }
 0x10a   :  { %v547_v24 = vadd.f32 %v484_v21, %v264_v23  ;;  %v531_v25 = vpop.f32.mrb[1].mxu1 }
 0x10c   :  { %489 = vst.msk [vmem:[#allocation5] sm:$0x1] %vm488_vm2, %v547_v24 }
 0x10d   :  { %593 = shalt.err (!%p590_p12)
}
 0x10e   :  { %s594_s4 = scalar_lea.hbm %s673_s3, 16 }
 0x10f   :  { %p595_p13 = scmp.ne.s32.totalorder %s673_s3, %s594_s4  ;;  %p598_p0 = scmp.lt.u32.totalorder %s594_s4, %s673_s3 }
 0x111   :  { %p600_p1 = pnand %p598_p0, %p595_p13 }
 0x113   :  { %603 = shalt.err (!%p600_p1)
}
 0x114   :  { %499 = dma.vmem_to_hbm [thread:$0]  %s497_s1, 16, %s673_s3, [#allocation4]  }
 0x115   :  { %606 = dma.done.wait [#allocation4], 16  }
 0x116   :  { %607 = vsyncadd [#allocation4], 4294967280 }
 0x117   :  { %503 = vsyncpa [#allocation3], 1 }
 0x118   :  { %504 = vsyncpa [#allocation4], 1 }

</bundles_post_ra>
